<compile_context>
chip_gen: v7x
topology: tpu7x:2x2x1
jax: 0.10.0
libtpu: 0.0.40
codegen_flags: <defaults>
</compile_context>

<pallas_src>
import functools
import math

import jax
import jax.numpy as jnp
from jax import lax
from jax.experimental import pallas as pl
from jax.experimental.pallas import tpu as pltpu


# ----------------------------------------------------------------------------------
# Pallas kernels
# ----------------------------------------------------------------------------------
def _mapping_kernel(z_ref, w_ref, b_ref, o_ref, *, scale, lr_mul, n_layers):
    """Fused StyleGAN2 mapping network: PixelNorm + n_layers x EqualLinear(lr_mul) +
    fused leaky-relu, all in one kernel (weights stay in VMEM)."""
    x = z_ref[...].astype(jnp.float32)
    x = x * lax.rsqrt(jnp.mean(x * x, axis=1, keepdims=True) + 1e-8)   # PixelNorm
    sqrt2 = math.sqrt(2.0)
    for l in range(n_layers):                                          # static unroll
        out = lax.dot_general(x.astype(jnp.bfloat16),
                              w_ref[l].astype(jnp.bfloat16),
                              (((1,), (1,)), ((), ())),
                              preferred_element_type=jnp.float32) * scale
        out = out + b_ref[l] * lr_mul
        x = jnp.where(out >= 0.0, out, 0.2 * out) * sqrt2              # fused lrelu
    o_ref[...] = x


def _equal_linear_kernel(x_ref, w_ref, b_ref, o_ref, *, scale, lr_mul):
    """Single EqualLinear (no activation): used for the domain embedding, the stacked
    hyper-network projection (lane-dense output) and the encoder stand-in."""
    out = lax.dot_general(x_ref[...].astype(jnp.bfloat16),
                          w_ref[...].astype(jnp.bfloat16),
                          (((1,), (1,)), ((), ())),
                          preferred_element_type=jnp.float32) * scale
    o_ref[...] = out + b_ref[...] * lr_mul


def _multi_style_kernel(x_ref, w_ref, b_ref, o_ref, *, scale, n_layers):
    """All per-layer modulation EqualLinears (conv + ToRGB) of one synthesize call,
    fused into a single kernel: out[l] = x[l] @ mod_w[l].T * scale + 1."""
    for l in range(n_layers):                                          # static unroll
        out = lax.dot_general(x_ref[l].astype(jnp.bfloat16),
                              w_ref[l].astype(jnp.bfloat16),
                              (((1,), (1,)), ((), ())),
                              preferred_element_type=jnp.float32) * scale
        o_ref[l] = out + b_ref[l]


def _modconv_kernel(*refs, wscale, alpha, demodulate, activate, use_rho, use_noise):
    """StyleGAN2 ModulatedConv2d for one batch sample (grid dim 0 = batch), lane-dense.

    - per-sample weight modulation by the style (expanded to Cin*k*k columns),
    - demodulation (rsqrt of sum of squares over Cin*k*k),
    - conv as an im2col matmul on the MXU with output (Cout, HW)  [HW = lane axis],
    - DynaGAN hyper-network per-output-channel domain scaling (1 + alpha*rho),
    - noise injection + bias + fused leaky-relu epilogue for StyledConv layers.
    """
    it = iter(refs)
    patch_ref = next(it)                      # (1, CK, HW)
    w_ref = next(it)                          # (Cout, CK)
    s_ref = next(it)                          # (1, 1, CK)
    rho_ref = next(it) if use_rho else None   # (1, Cout, 1)
    bias_ref = next(it)                       # (Cout, 1)
    noise_ref = next(it) if use_noise else None   # (1, HW)
    o_ref = next(it)                          # (1, Cout, HW)

    patches = patch_ref[0].astype(jnp.bfloat16)            # (CK, HW)
    w = w_ref[...].astype(jnp.float32) * wscale            # (Cout, CK)
    s = s_ref[0].astype(jnp.float32)                       # (1, CK)
    wm = w * s                                             # modulate
    if demodulate:
        d = lax.rsqrt(jnp.sum(wm * wm, axis=1, keepdims=True) + 1e-8)
        wm = wm * d                                        # demodulate
    out = lax.dot_general(wm.astype(jnp.bfloat16), patches,
                          (((1,), (0,)), ((), ())),
                          preferred_element_type=jnp.float32)     # (Cout, HW)
    if use_rho:
        out = out * (1.0 + alpha * rho_ref[0])             # DynaGAN domain scaling
    out = out + bias_ref[...]                              # bias (Cout,1) bcast over HW
    if use_noise:
        out = out + noise_ref[...]                         # noise (1,HW) bcast over Cout
    if activate:
        out = jnp.where(out >= 0.0, out, 0.2 * out) * math.sqrt(2.0)
    o_ref[0] = out


# ----------------------------------------------------------------------------------
# Pallas wrappers
# ----------------------------------------------------------------------------------
def mapping_forward(z, w_stack, b_stack, *, lr_mul):
    B, latent = z.shape
    L = w_stack.shape[0]
    scale = (1.0 / math.sqrt(latent)) * lr_mul
    kern = functools.partial(_mapping_kernel, scale=scale, lr_mul=lr_mul, n_layers=L)
    return pl.pallas_call(
        kern,
        out_shape=jax.ShapeDtypeStruct((B, latent), jnp.float32),
        grid=(1,),
        in_specs=[pl.BlockSpec((B, latent), lambda i: (0, 0)),
                  pl.BlockSpec((L, latent, latent), lambda i: (0, 0, 0)),
                  pl.BlockSpec((L, 1, latent), lambda i: (0, 0, 0))],
        out_specs=pl.BlockSpec((B, latent), lambda i: (0, 0)),
    )(z, w_stack, b_stack)


def equal_linear(x, w, b, *, lr_mul=1.0):
    B, in_dim = x.shape
    out_dim = w.shape[0]
    scale = (1.0 / math.sqrt(in_dim)) * lr_mul
    kern = functools.partial(_equal_linear_kernel, scale=scale, lr_mul=lr_mul)
    return pl.pallas_call(
        kern,
        out_shape=jax.ShapeDtypeStruct((B, out_dim), jnp.float32),
        grid=(1,),
        in_specs=[pl.BlockSpec((B, in_dim), lambda i: (0, 0)),
                  pl.BlockSpec((out_dim, in_dim), lambda i: (0, 0)),
                  pl.BlockSpec((1, out_dim), lambda i: (0, 0))],
        out_specs=pl.BlockSpec((B, out_dim), lambda i: (0, 0)),
    )(x, w, b.reshape(1, out_dim))


def multi_style_projection(w_sel, mod_w_stacked, mod_b_stacked):
    """w_sel: (L, B, latent); mod_w: (L, C, latent); mod_b: (L, 1, C) -> (L, B, C)."""
    L, B, latent = w_sel.shape
    C = mod_w_stacked.shape[1]
    kern = functools.partial(_multi_style_kernel, scale=1.0 / math.sqrt(latent),
                             n_layers=L)
    return pl.pallas_call(
        kern,
        out_shape=jax.ShapeDtypeStruct((L, B, C), jnp.float32),
        grid=(1,),
        in_specs=[pl.BlockSpec((L, B, latent), lambda i: (0, 0, 0)),
                  pl.BlockSpec((L, C, latent), lambda i: (0, 0, 0)),
                  pl.BlockSpec((L, 1, C), lambda i: (0, 0, 0))],
        out_specs=pl.BlockSpec((L, B, C), lambda i: (0, 0, 0)),
    )(w_sel, mod_w_stacked, mod_b_stacked)


def modulated_conv(x_nchw, weight, style, rho, bias, noise, *, demodulate, activate,
                   alpha):
    """x: (B,C,H,W) NCHW; weight: (Cout,Cin,k,k); style: (B,Cin); rho: (B,Cout) or None;
    bias: (Cout,); noise: (H*W,) or None.  Returns NCHW (B,Cout,H,W), lane-dense HW."""
    B, C, H, W = x_nchw.shape
    Cout, Cin, k, _ = weight.shape
    HW, CK = H * W, Cin * k * k
    if k == 1:
        patches = x_nchw.reshape(B, CK, HW)
    else:
        patches = _im2col_t(x_nchw, k)                       # (B, CK, HW)   [glue]
    wflat = weight.reshape(Cout, CK)
    scol = jnp.repeat(style, k * k, axis=-1)[:, None, :]     # (B,1,CK), col = c*k*k+off
    wscale = 1.0 / math.sqrt(CK)
    use_rho = rho is not None
    use_noise = noise is not None

    inputs = [patches, wflat, scol]
    in_specs = [pl.BlockSpec((1, CK, HW), lambda b: (b, 0, 0)),
                pl.BlockSpec((Cout, CK), lambda b: (0, 0)),
                pl.BlockSpec((1, 1, CK), lambda b: (b, 0, 0))]
    if use_rho:
        inputs.append(rho[:, :, None])                       # (B, Cout, 1)
        in_specs.append(pl.BlockSpec((1, Cout, 1), lambda b: (b, 0, 0)))
    inputs.append(bias.reshape(Cout, 1))
    in_specs.append(pl.BlockSpec((Cout, 1), lambda b: (0, 0)))
    if use_noise:
        inputs.append(noise.reshape(1, HW))
        in_specs.append(pl.BlockSpec((1, HW), lambda b: (0, 0)))

    kern = functools.partial(_modconv_kernel, wscale=wscale, alpha=alpha,
                             demodulate=demodulate, activate=activate,
                             use_rho=use_rho, use_noise=use_noise)
    out = pl.pallas_call(
        kern,
        out_shape=jax.ShapeDtypeStruct((B, Cout, HW), jnp.float32),
        grid=(B,),
        in_specs=in_specs,
        out_specs=pl.BlockSpec((1, Cout, HW), lambda b: (b, 0, 0)),
        compiler_params=pltpu.CompilerParams(dimension_semantics=("parallel",)),
    )(*inputs)
    return out.reshape(B, Cout, H, W)                        # already NCHW, no transpose


# ----------------------------------------------------------------------------------
# plain-JAX glue (fused by XLA under jit)
# ----------------------------------------------------------------------------------
def _im2col_t(x_nchw, k):
    """(B,C,H,W) -> (B, C*k*k, H*W), column index = c*k*k + (dy*k+dx).  No transposes."""
    B, C, H, W = x_nchw.shape
    pad = k // 2
    xp = jnp.pad(x_nchw, ((0, 0), (0, 0), (pad, pad), (pad, pad)))
    cols = [xp[:, :, dy:dy + H, dx:dx + W] for dy in range(k) for dx in range(k)]
    p = jnp.stack(cols, axis=2)                    # (B, C, k*k, H, W)
    return p.reshape(B, C * k * k, H * W)


def _upsample_nearest(x_nchw):
    # TODO(synk): StyleGAN2 blur / upfirdn2d (transposed-conv) upsample replaced by nearest.
    return jnp.repeat(jnp.repeat(x_nchw, 2, axis=2), 2, axis=3)


# ----------------------------------------------------------------------------------
# DynaGAN model (frozen + trainable StyleGAN2 generators with domain hyper-nets)
# ----------------------------------------------------------------------------------
class DynaGANPallas:
    def __init__(self, key, *, latent=32, c_dim=2, channel=32, img_size=16,
                 map_layers=8, l2_lambda=1.0):
        self.latent, self.channel, self.img_size, self.c_dim = latent, channel, img_size, c_dim
        self.l2_lambda = l2_lambda
        log_size = int(math.log2(img_size))
        self.n_latent = log_size * 2 - 2          # == generator.n_latent
        self.num_levels = log_size - 2            # resolutions above 4x4
        self.n_styled = 1 + 2 * self.num_levels
        self.n_rgb = 1 + self.num_levels

        keys = jax.random.split(key, 64)
        ki = iter(keys)
        nrm = lambda shape: jax.random.normal(next(ki), shape, jnp.float32)

        # mapping network, stacked for the fused kernel (shared: trainable generator is
        # initialized from the same g_ema checkpoint, then augmented with hyper-nets)
        self.mapping_w = nrm((map_layers, latent, latent))
        self.mapping_b = jnp.zeros((map_layers, 1, latent), jnp.float32)

        # synthesis network
        self.const = nrm((1, channel, 4, 4))
        self.conv_w = [nrm((channel, channel, 3, 3)) for _ in range(self.n_styled)]
        self.conv_bias = [jnp.zeros((channel,), jnp.float32) for _ in range(self.n_styled)]
        self.conv_noise_strength = [jnp.zeros((), jnp.float32)          # init 0 (StyleGAN2)
                                    for _ in range(self.n_styled)]
        self.rgb_w = [nrm((3, channel, 1, 1)) for _ in range(self.n_rgb)]
        self.rgb_bias = [jnp.zeros((3,), jnp.float32) for _ in range(self.n_rgb)]

        # per-layer modulation EqualLinears, stacked for the fused style-projection kernel
        conv_mod_w = [nrm((channel, latent)) for _ in range(self.n_styled)]
        rgb_mod_w = [nrm((channel, latent)) for _ in range(self.n_rgb)]
        self.mod_w_stacked = jnp.stack(conv_mod_w + rgb_mod_w)           # (L, C, latent)
        self.mod_b_stacked = jnp.ones((self.n_styled + self.n_rgb, 1, channel),
                                      jnp.float32)                      # mod bias init 1

        # DynaGAN domain modulation: label embedding + per-conv hypernet
        # (style residual gamma on Cin, weight scaling rho on Cout), stacked lane-dense
        hyper_gamma_w = [nrm((channel, latent)) * 0.1 for _ in range(self.n_styled)]
        hyper_rho_w = [nrm((channel, latent)) * 0.1 for _ in range(self.n_styled)]
        self.hyper_w_stacked = jnp.concatenate(
            [jnp.concatenate(hyper_gamma_w, axis=0),
             jnp.concatenate(hyper_rho_w, axis=0)], axis=0)              # (2*n*C, latent)
        self.hyper_b_stacked = jnp.zeros((2 * self.n_styled * channel,), jnp.float32)
        self.embed_w = nrm((latent, c_dim))
        self.embed_b = jnp.zeros((latent,), jnp.float32)

        # TODO(synk): e4e / IR-SE50 encoder has no clean Pallas equivalent; approximated
        # by a single EqualLinear projection (Pallas matmul) to W+ residuals.
        enc_in = 3 * img_size * img_size
        self.enc_w = nrm((self.n_latent * latent, enc_in)) * 0.1
        self.enc_b = jnp.zeros((self.n_latent * latent,), jnp.float32)

        # fixed per-layer noise buffers (deterministic stand-in for randomize_noise=True)
        self.noise = []
        for l in range(self.n_styled):
            res = 4 * (2 ** ((l + 1) // 2))
            self.noise.append(jax.random.normal(next(ki), (res * res,), jnp.float32))

        # which W+ slice each conv / ToRGB layer consumes (StyleGAN2 ordering)
        conv_idx = [0] + [i for lvl in range(self.num_levels)
                          for i in (1 + 2 * lvl, 2 + 2 * lvl)]
        rgb_idx = [1] + [3 + 2 * lvl for lvl in range(self.num_levels)]
        self._latent_idx = jnp.array(conv_idx + rgb_idx, dtype=jnp.int32)

        # mean latent (module computes it from the checkpoint / 100k samples)
        zs = jax.random.normal(next(ki), (8, latent), jnp.float32)
        self.mean_latent = jnp.mean(self.style(zs), axis=0, keepdims=True)   # (1, latent)

    # --- mapping network: z -> w (one fused kernel) ---
    def style(self, z):
        return mapping_forward(z, self.mapping_w, self.mapping_b, lr_mul=0.01)

    def embedding(self, onehot):
        return equal_linear(onehot, self.embed_w, self.embed_b)

    # --- domain hyper-network: dom latent -> (gamma, rho) for every styled conv ---
    def domain_hyper(self, dom_latent):
        B = dom_latent.shape[0]
        n, C = self.n_styled, self.channel
        gr = equal_linear(dom_latent, self.hyper_w_stacked, self.hyper_b_stacked)
        gamma = gr[:, :n * C].reshape(B, n, C)
        rho = gr[:, n * C:].reshape(B, n, C)
        return gamma, rho

    # --- one StyledConv (modulated 3x3 conv + noise + fused leaky relu) ---
    def _styled_conv(self, x, layer, style, rho_l, alpha, up=False):
        if up:
            x = _upsample_nearest(x)
        noise = self.conv_noise_strength[layer] * self.noise[layer]     # (HW,)
        return modulated_conv(x, self.conv_w[layer], style, rho_l, self.conv_bias[layer],
                              noise, demodulate=True, activate=True, alpha=alpha)

    # --- ToRGB (modulated 1x1 conv, no demod, no activation, no domain hypernet) ---
    def _to_rgb(self, x, style, idx):
        return modulated_conv(x, self.rgb_w[idx], style, None, self.rgb_bias[idx], None,
                              demodulate=False, activate=False, alpha=0.0)

    # --- synthesis: W+ latents (+ optional per-layer gamma/rho) -> NCHW image ---
    def synthesize(self, w_plus, gamma=None, rho=None, alpha=1.0):
        B = w_plus.shape[0]
        # all per-layer style projections in ONE kernel
        w_sel = jnp.transpose(w_plus[:, self._latent_idx, :], (1, 0, 2))   # (L, B, latent)
        styles = multi_style_projection(w_sel, self.mod_w_stacked, self.mod_b_stacked)
        conv_styles = styles[:self.n_styled]                 # (n_styled, B, C)
        rgb_styles = styles[self.n_styled:]                  # (n_rgb,   B, C)

        def conv_style(l):
            s = conv_styles[l]
            if gamma is not None:
                s = s + alpha * gamma[:, l]                  # DynaGAN style residual
            return s

        def conv_rho(l):
            return None if rho is None else rho[:, l]

        x = jnp.broadcast_to(self.const, (B, self.channel, 4, 4))
        x = self._styled_conv(x, 0, conv_style(0), conv_rho(0), alpha, up=False)
        skip = self._to_rgb(x, rgb_styles[0], 0)
        layer = 1
        for lvl in range(self.num_levels):
            x = self._styled_conv(x, layer, conv_style(layer), conv_rho(layer),
                                  alpha, up=True)
            x = self._styled_conv(x, layer + 1, conv_style(layer + 1), conv_rho(layer + 1),
                                  alpha, up=False)
            rgb = self._to_rgb(x, rgb_styles[lvl + 1], lvl + 1)
            skip = _upsample_nearest(skip) + rgb
            layer += 2
        return skip                                          # (B, 3, H, W) NCHW

    # --- DynaGAN.forward ---
    def forward(self, styles, truncation=1.0, domain_labels=(None,), target_img_H=None,
                target_img_L=None, randomize_noise=True, inference=False,
                domain_is_latents=True):
        z = styles[0]
        B = z.shape[0]

        # "with torch.no_grad()" block (forward-only here)
        w = self.style(z)                                    # frozen mapping
        w_plus = jnp.repeat(w[:, None, :], self.n_latent, axis=1)

        # TODO(synk): CLIP ViT-B/16 image embedding of target_img_H (pretrained model).
        new_img, zp_img_256 = target_img_H, target_img_L

        res = equal_linear(new_img.reshape(B, -1), self.enc_w, self.enc_b)
        res = res.reshape(B, self.n_latent, self.latent) * 0.8   # [:, :7]*=0.8 ; [:, 7:]*=0.8
        zp_target_latent = self.mean_latent[None, :, :] + res    # mean_latent[None,:] + res

        dom_onehot = domain_labels[0]
        dom_latent = self.embedding(dom_onehot)              # domain label -> latent
        gamma, rho = self.domain_hyper(dom_latent)           # (B, n_styled, C) each

        if inference:
            frozen_img = self.synthesize(w_plus)
            dom_b = jnp.broadcast_to(dom_latent[0:1], dom_latent.shape)
            gamma_b, rho_b = self.domain_hyper(dom_b)
            rec_img = self.synthesize(zp_target_latent, gamma_b, rho_b)
            without_color_img = self.synthesize(w_plus, gamma, rho)
            tmp = truncation * (w - self.mean_latent) + self.mean_latent
            tmp = jnp.repeat(tmp[:, None, :], self.n_latent, axis=1)
            if self.n_latent > 7:
                tmp = tmp.at[:, 7:, :].set(zp_target_latent[:, 7:, :])
            color_img = self.synthesize(tmp, gamma, rho)
            return [frozen_img, color_img, rec_img, without_color_img], None

        # batch frozen / old / rec / trainable generator passes into ONE synthesize
        # (gamma = rho = 0 reproduces the no-domain frozen generator exactly)
        zero_g, zero_r = jnp.zeros_like(gamma), jnp.zeros_like(rho)
        lat_all = jnp.concatenate([w_plus, zp_target_latent, zp_target_latent, w_plus], 0)
        gamma_all = jnp.concatenate([zero_g, zero_g, gamma, gamma], 0)
        rho_all = jnp.concatenate([zero_r, zero_r, rho, rho], 0)
        imgs = self.synthesize(lat_all, gamma_all, rho_all, alpha=1.0)   # (4B, 3, H, W)
        frozen_img = imgs[0 * B:1 * B]
        old_img = imgs[1 * B:2 * B]          # computed for fidelity (used by CLIP losses)
        rec_img = imgs[2 * B:3 * B]
        trainable_img = imgs[3 * B:4 * B]
        del frozen_img, old_img

        # TODO(synk): CLIP directional / within / rec losses, LPIPS, contrastive and
        # ArcFace/Moco ID losses need pretrained networks — not reproduced (set to 0).
        # TODO(synk): BicubicDownSample(factor=size/256) is identity at this synthetic size.
        l2 = jnp.mean((rec_img - zp_img_256) ** 2)
        zero = jnp.zeros((), jnp.float32)
        loss_dict = {
            "clip_across_loss": zero, "clip_within_loss": zero, "ref_clip_loss": zero,
            "l2_loss": l2, "lpips_loss": zero,
        }
        loss = self.l2_lambda * l2
        return [trainable_img, rec_img, (None, None), loss_dict], loss


# ----------------------------------------------------------------------------------
if __name__ == "__main__":
    key = jax.random.PRNGKey(0)
    k_model, k_z, k_h, k_l = jax.random.split(key, 4)

    B, LATENT, C_DIM, IMG, CH = 2, 32, 2, 16, 32
    model = DynaGANPallas(k_model, latent=LATENT, c_dim=C_DIM, channel=CH,
                          img_size=IMG, map_layers=8)

    z = jax.random.normal(k_z, (B, LATENT), jnp.float32)
    domain_onehot = jnp.eye(C_DIM, dtype=jnp.float32)[:B]        # torch.eye(args.batch)
    target_H = jax.random.normal(k_h, (B, 3, IMG, IMG), jnp.float32)
    target_L = jax.random.normal(k_l, (B, 3, IMG, IMG), jnp.float32)

    fwd = jax.jit(lambda z_, oh_, th_, tl_: model.forward(
        [z_], domain_labels=[oh_], target_img_H=th_, target_img_L=tl_))

    outs, loss = fwd(z, domain_onehot, target_H, target_L)
    trainable_img, rec_img, _, loss_dict = outs
    jax.block_until_ready((trainable_img, rec_img, loss))

    assert trainable_img.shape == (B, 3, IMG, IMG)
    assert rec_img.shape == (B, 3, IMG, IMG)
    assert jnp.isfinite(loss)
    assert jnp.isfinite(loss_dict["l2_loss"])
    print("KERNEL_OK")
</pallas_src>

<mosaic_0001>
module attributes {stable_mosaic.version = 11 : i64} {
  func.func @_mapping_kernel(%arg0: i32, %arg1: memref<8x32xf32, #tpu.memory_space<vmem>>, %arg2: memref<8x32x32xf32, #tpu.memory_space<vmem>>, %arg3: memref<8x1x32xf32, #tpu.memory_space<vmem>>, %arg4: memref<8x32xf32, #tpu.memory_space<vmem>>) attributes {dimension_semantics = [#tpu.dimension_semantics<arbitrary>], iteration_bounds = array<i64: 1>, scalar_prefetch = 0 : i64, scratch_operands = 0 : i64, tpu.core_type = #tpu.core_type<tc>, window_params = [{pipeline_mode = #tpu.pipeline_mode<synchronous>, transform_indices = @transform_0, window_bounds = array<i64: 8, 32>}, {pipeline_mode = #tpu.pipeline_mode<synchronous>, transform_indices = @transform_1, window_bounds = array<i64: 8, 32, 32>}, {pipeline_mode = #tpu.pipeline_mode<synchronous>, transform_indices = @transform_2, window_bounds = array<i64: 8, 1, 32>}, {pipeline_mode = #tpu.pipeline_mode<synchronous>, transform_indices = @transform_3, window_bounds = array<i64: 8, 32>}]} {
    %c0 = arith.constant 0 : index
    %c0_0 = arith.constant 0 : index
    %0 = vector.load %arg1[%c0, %c0_0] : memref<8x32xf32, #tpu.memory_space<vmem>>, vector<8x32xf32>
    %1 = arith.mulf %0, %0 : vector<8x32xf32>
    %cst = arith.constant dense<0.000000e+00> : vector<8xf32>
    %2 = vector.multi_reduction <add>, %1, %cst [1] : vector<8x32xf32> to vector<8xf32>
    %3 = vector.shape_cast %2 : vector<8xf32> to vector<8x1xf32>
    %cst_1 = arith.constant 3.200000e+01 : f32
    %4 = vector.broadcast %cst_1 : f32 to vector<8x1xf32>
    %5 = arith.divf %3, %4 : vector<8x1xf32>
    %cst_2 = arith.constant 9.99999993E-9 : f32
    %6 = vector.broadcast %cst_2 : f32 to vector<8x1xf32>
    %7 = arith.addf %5, %6 : vector<8x1xf32>
    %8 = math.rsqrt %7 : vector<8x1xf32>
    %9 = vector.broadcast %8 : vector<8x1xf32> to vector<8x32xf32>
    %10 = arith.mulf %0, %9 : vector<8x32xf32>
    %11 = arith.truncf %10 : vector<8x32xf32> to vector<8x32xbf16>
    %c0_3 = arith.constant 0 : index
    %c0_4 = arith.constant 0 : index
    %c0_5 = arith.constant 0 : index
    %12 = vector.load %arg2[%c0_3, %c0_4, %c0_5] : memref<8x32x32xf32, #tpu.memory_space<vmem>>, vector<1x32x32xf32>
    %13 = vector.shape_cast %12 : vector<1x32x32xf32> to vector<32x32xf32>
    %14 = arith.truncf %13 : vector<32x32xf32> to vector<32x32xbf16>
    %cst_6 = arith.constant dense<0.000000e+00> : vector<8x32xf32>
    %15 = tpu.matmul %11, %14, %cst_6 {dimension_numbers = #tpu.dot_dimension_numbers<[1], [1], [0], [0], [0, 0, 1, 0], [], []>} : vector<8x32xbf16>, vector<32x32xbf16>, vector<8x32xf32> -> vector<8x32xf32>
    %cst_7 = arith.constant 0.00176776689 : f32
    %16 = vector.broadcast %cst_7 : f32 to vector<8x32xf32>
    %17 = arith.mulf %15, %16 : vector<8x32xf32>
    %c0_8 = arith.constant 0 : index
    %c0_9 = arith.constant 0 : index
    %c0_10 = arith.constant 0 : index
    %18 = vector.load %arg3[%c0_8, %c0_9, %c0_10] : memref<8x1x32xf32, #tpu.memory_space<vmem>>, vector<1x1x32xf32>
    %19 = vector.shape_cast %18 : vector<1x1x32xf32> to vector<1x32xf32>
    %cst_11 = arith.constant 0.00999999977 : f32
    %20 = vector.broadcast %cst_11 : f32 to vector<1x32xf32>
    %21 = arith.mulf %19, %20 : vector<1x32xf32>
    %22 = vector.broadcast %21 : vector<1x32xf32> to vector<8x32xf32>
    %23 = arith.addf %17, %22 : vector<8x32xf32>
    %cst_12 = arith.constant 0.000000e+00 : f32
    %24 = vector.broadcast %cst_12 : f32 to vector<8x32xf32>
    %25 = arith.cmpf oge, %23, %24 : vector<8x32xf32>
    %cst_13 = arith.constant 2.000000e-01 : f32
    %26 = vector.broadcast %cst_13 : f32 to vector<8x32xf32>
    %27 = arith.mulf %26, %23 : vector<8x32xf32>
    %28 = arith.select %25, %23, %27 : vector<8x32xi1>, vector<8x32xf32>
    %cst_14 = arith.constant 1.41421354 : f32
    %29 = vector.broadcast %cst_14 : f32 to vector<8x32xf32>
    %30 = arith.mulf %28, %29 : vector<8x32xf32>
    %31 = arith.truncf %30 : vector<8x32xf32> to vector<8x32xbf16>
    %c1 = arith.constant 1 : index
    %c0_15 = arith.constant 0 : index
    %c0_16 = arith.constant 0 : index
    %32 = vector.load %arg2[%c1, %c0_15, %c0_16] : memref<8x32x32xf32, #tpu.memory_space<vmem>>, vector<1x32x32xf32>
    %33 = vector.shape_cast %32 : vector<1x32x32xf32> to vector<32x32xf32>
    %34 = arith.truncf %33 : vector<32x32xf32> to vector<32x32xbf16>
    %cst_17 = arith.constant dense<0.000000e+00> : vector<8x32xf32>
    %35 = tpu.matmul %31, %34, %cst_17 {dimension_numbers = #tpu.dot_dimension_numbers<[1], [1], [0], [0], [0, 0, 1, 0], [], []>} : vector<8x32xbf16>, vector<32x32xbf16>, vector<8x32xf32> -> vector<8x32xf32>
    %cst_18 = arith.constant 0.00176776689 : f32
    %36 = vector.broadcast %cst_18 : f32 to vector<8x32xf32>
    %37 = arith.mulf %35, %36 : vector<8x32xf32>
    %c1_19 = arith.constant 1 : index
    %c0_20 = arith.constant 0 : index
    %c0_21 = arith.constant 0 : index
    %38 = vector.load %arg3[%c1_19, %c0_20, %c0_21] : memref<8x1x32xf32, #tpu.memory_space<vmem>>, vector<1x1x32xf32>
    %39 = vector.shape_cast %38 : vector<1x1x32xf32> to vector<1x32xf32>
    %cst_22 = arith.constant 0.00999999977 : f32
    %40 = vector.broadcast %cst_22 : f32 to vector<1x32xf32>
    %41 = arith.mulf %39, %40 : vector<1x32xf32>
    %42 = vector.broadcast %41 : vector<1x32xf32> to vector<8x32xf32>
    %43 = arith.addf %37, %42 : vector<8x32xf32>
    %cst_23 = arith.constant 0.000000e+00 : f32
    %44 = vector.broadcast %cst_23 : f32 to vector<8x32xf32>
    %45 = arith.cmpf oge, %43, %44 : vector<8x32xf32>
    %cst_24 = arith.constant 2.000000e-01 : f32
    %46 = vector.broadcast %cst_24 : f32 to vector<8x32xf32>
    %47 = arith.mulf %46, %43 : vector<8x32xf32>
    %48 = arith.select %45, %43, %47 : vector<8x32xi1>, vector<8x32xf32>
    %cst_25 = arith.constant 1.41421354 : f32
    %49 = vector.broadcast %cst_25 : f32 to vector<8x32xf32>
    %50 = arith.mulf %48, %49 : vector<8x32xf32>
    %51 = arith.truncf %50 : vector<8x32xf32> to vector<8x32xbf16>
    %c2 = arith.constant 2 : index
    %c0_26 = arith.constant 0 : index
    %c0_27 = arith.constant 0 : index
    %52 = vector.load %arg2[%c2, %c0_26, %c0_27] : memref<8x32x32xf32, #tpu.memory_space<vmem>>, vector<1x32x32xf32>
    %53 = vector.shape_cast %52 : vector<1x32x32xf32> to vector<32x32xf32>
    %54 = arith.truncf %53 : vector<32x32xf32> to vector<32x32xbf16>
    %cst_28 = arith.constant dense<0.000000e+00> : vector<8x32xf32>
    %55 = tpu.matmul %51, %54, %cst_28 {dimension_numbers = #tpu.dot_dimension_numbers<[1], [1], [0], [0], [0, 0, 1, 0], [], []>} : vector<8x32xbf16>, vector<32x32xbf16>, vector<8x32xf32> -> vector<8x32xf32>
    %cst_29 = arith.constant 0.00176776689 : f32
    %56 = vector.broadcast %cst_29 : f32 to vector<8x32xf32>
    %57 = arith.mulf %55, %56 : vector<8x32xf32>
    %c2_30 = arith.constant 2 : index
    %c0_31 = arith.constant 0 : index
    %c0_32 = arith.constant 0 : index
    %58 = vector.load %arg3[%c2_30, %c0_31, %c0_32] : memref<8x1x32xf32, #tpu.memory_space<vmem>>, vector<1x1x32xf32>
    %59 = vector.shape_cast %58 : vector<1x1x32xf32> to vector<1x32xf32>
    %cst_33 = arith.constant 0.00999999977 : f32
    %60 = vector.broadcast %cst_33 : f32 to vector<1x32xf32>
    %61 = arith.mulf %59, %60 : vector<1x32xf32>
    %62 = vector.broadcast %61 : vector<1x32xf32> to vector<8x32xf32>
    %63 = arith.addf %57, %62 : vector<8x32xf32>
    %cst_34 = arith.constant 0.000000e+00 : f32
    %64 = vector.broadcast %cst_34 : f32 to vector<8x32xf32>
    %65 = arith.cmpf oge, %63, %64 : vector<8x32xf32>
    %cst_35 = arith.constant 2.000000e-01 : f32
    %66 = vector.broadcast %cst_35 : f32 to vector<8x32xf32>
    %67 = arith.mulf %66, %63 : vector<8x32xf32>
    %68 = arith.select %65, %63, %67 : vector<8x32xi1>, vector<8x32xf32>
    %cst_36 = arith.constant 1.41421354 : f32
    %69 = vector.broadcast %cst_36 : f32 to vector<8x32xf32>
    %70 = arith.mulf %68, %69 : vector<8x32xf32>
    %71 = arith.truncf %70 : vector<8x32xf32> to vector<8x32xbf16>
    %c3 = arith.constant 3 : index
    %c0_37 = arith.constant 0 : index
    %c0_38 = arith.constant 0 : index
    %72 = vector.load %arg2[%c3, %c0_37, %c0_38] : memref<8x32x32xf32, #tpu.memory_space<vmem>>, vector<1x32x32xf32>
    %73 = vector.shape_cast %72 : vector<1x32x32xf32> to vector<32x32xf32>
    %74 = arith.truncf %73 : vector<32x32xf32> to vector<32x32xbf16>
    %cst_39 = arith.constant dense<0.000000e+00> : vector<8x32xf32>
    %75 = tpu.matmul %71, %74, %cst_39 {dimension_numbers = #tpu.dot_dimension_numbers<[1], [1], [0], [0], [0, 0, 1, 0], [], []>} : vector<8x32xbf16>, vector<32x32xbf16>, vector<8x32xf32> -> vector<8x32xf32>
    %cst_40 = arith.constant 0.00176776689 : f32
    %76 = vector.broadcast %cst_40 : f32 to vector<8x32xf32>
    %77 = arith.mulf %75, %76 : vector<8x32xf32>
    %c3_41 = arith.constant 3 : index
    %c0_42 = arith.constant 0 : index
    %c0_43 = arith.constant 0 : index
    %78 = vector.load %arg3[%c3_41, %c0_42, %c0_43] : memref<8x1x32xf32, #tpu.memory_space<vmem>>, vector<1x1x32xf32>
    %79 = vector.shape_cast %78 : vector<1x1x32xf32> to vector<1x32xf32>
    %cst_44 = arith.constant 0.00999999977 : f32
    %80 = vector.broadcast %cst_44 : f32 to vector<1x32xf32>
    %81 = arith.mulf %79, %80 : vector<1x32xf32>
    %82 = vector.broadcast %81 : vector<1x32xf32> to vector<8x32xf32>
    %83 = arith.addf %77, %82 : vector<8x32xf32>
    %cst_45 = arith.constant 0.000000e+00 : f32
    %84 = vector.broadcast %cst_45 : f32 to vector<8x32xf32>
    %85 = arith.cmpf oge, %83, %84 : vector<8x32xf32>
    %cst_46 = arith.constant 2.000000e-01 : f32
    %86 = vector.broadcast %cst_46 : f32 to vector<8x32xf32>
    %87 = arith.mulf %86, %83 : vector<8x32xf32>
    %88 = arith.select %85, %83, %87 : vector<8x32xi1>, vector<8x32xf32>
    %cst_47 = arith.constant 1.41421354 : f32
    %89 = vector.broadcast %cst_47 : f32 to vector<8x32xf32>
    %90 = arith.mulf %88, %89 : vector<8x32xf32>
    %91 = arith.truncf %90 : vector<8x32xf32> to vector<8x32xbf16>
    %c4 = arith.constant 4 : index
    %c0_48 = arith.constant 0 : index
    %c0_49 = arith.constant 0 : index
    %92 = vector.load %arg2[%c4, %c0_48, %c0_49] : memref<8x32x32xf32, #tpu.memory_space<vmem>>, vector<1x32x32xf32>
    %93 = vector.shape_cast %92 : vector<1x32x32xf32> to vector<32x32xf32>
    %94 = arith.truncf %93 : vector<32x32xf32> to vector<32x32xbf16>
    %cst_50 = arith.constant dense<0.000000e+00> : vector<8x32xf32>
    %95 = tpu.matmul %91, %94, %cst_50 {dimension_numbers = #tpu.dot_dimension_numbers<[1], [1], [0], [0], [0, 0, 1, 0], [], []>} : vector<8x32xbf16>, vector<32x32xbf16>, vector<8x32xf32> -> vector<8x32xf32>
    %cst_51 = arith.constant 0.00176776689 : f32
    %96 = vector.broadcast %cst_51 : f32 to vector<8x32xf32>
    %97 = arith.mulf %95, %96 : vector<8x32xf32>
    %c4_52 = arith.constant 4 : index
    %c0_53 = arith.constant 0 : index
    %c0_54 = arith.constant 0 : index
    %98 = vector.load %arg3[%c4_52, %c0_53, %c0_54] : memref<8x1x32xf32, #tpu.memory_space<vmem>>, vector<1x1x32xf32>
    %99 = vector.shape_cast %98 : vector<1x1x32xf32> to vector<1x32xf32>
    %cst_55 = arith.constant 0.00999999977 : f32
    %100 = vector.broadcast %cst_55 : f32 to vector<1x32xf32>
    %101 = arith.mulf %99, %100 : vector<1x32xf32>
    %102 = vector.broadcast %101 : vector<1x32xf32> to vector<8x32xf32>
    %103 = arith.addf %97, %102 : vector<8x32xf32>
    %cst_56 = arith.constant 0.000000e+00 : f32
    %104 = vector.broadcast %cst_56 : f32 to vector<8x32xf32>
    %105 = arith.cmpf oge, %103, %104 : vector<8x32xf32>
    %cst_57 = arith.constant 2.000000e-01 : f32
    %106 = vector.broadcast %cst_57 : f32 to vector<8x32xf32>
    %107 = arith.mulf %106, %103 : vector<8x32xf32>
    %108 = arith.select %105, %103, %107 : vector<8x32xi1>, vector<8x32xf32>
    %cst_58 = arith.constant 1.41421354 : f32
    %109 = vector.broadcast %cst_58 : f32 to vector<8x32xf32>
    %110 = arith.mulf %108, %109 : vector<8x32xf32>
    %111 = arith.truncf %110 : vector<8x32xf32> to vector<8x32xbf16>
    %c5 = arith.constant 5 : index
    %c0_59 = arith.constant 0 : index
    %c0_60 = arith.constant 0 : index
    %112 = vector.load %arg2[%c5, %c0_59, %c0_60] : memref<8x32x32xf32, #tpu.memory_space<vmem>>, vector<1x32x32xf32>
    %113 = vector.shape_cast %112 : vector<1x32x32xf32> to vector<32x32xf32>
    %114 = arith.truncf %113 : vector<32x32xf32> to vector<32x32xbf16>
    %cst_61 = arith.constant dense<0.000000e+00> : vector<8x32xf32>
    %115 = tpu.matmul %111, %114, %cst_61 {dimension_numbers = #tpu.dot_dimension_numbers<[1], [1], [0], [0], [0, 0, 1, 0], [], []>} : vector<8x32xbf16>, vector<32x32xbf16>, vector<8x32xf32> -> vector<8x32xf32>
    %cst_62 = arith.constant 0.00176776689 : f32
    %116 = vector.broadcast %cst_62 : f32 to vector<8x32xf32>
    %117 = arith.mulf %115, %116 : vector<8x32xf32>
    %c5_63 = arith.constant 5 : index
    %c0_64 = arith.constant 0 : index
    %c0_65 = arith.constant 0 : index
    %118 = vector.load %arg3[%c5_63, %c0_64, %c0_65] : memref<8x1x32xf32, #tpu.memory_space<vmem>>, vector<1x1x32xf32>
    %119 = vector.shape_cast %118 : vector<1x1x32xf32> to vector<1x32xf32>
    %cst_66 = arith.constant 0.00999999977 : f32
    %120 = vector.broadcast %cst_66 : f32 to vector<1x32xf32>
    %121 = arith.mulf %119, %120 : vector<1x32xf32>
    %122 = vector.broadcast %121 : vector<1x32xf32> to vector<8x32xf32>
    %123 = arith.addf %117, %122 : vector<8x32xf32>
    %cst_67 = arith.constant 0.000000e+00 : f32
    %124 = vector.broadcast %cst_67 : f32 to vector<8x32xf32>
    %125 = arith.cmpf oge, %123, %124 : vector<8x32xf32>
    %cst_68 = arith.constant 2.000000e-01 : f32
    %126 = vector.broadcast %cst_68 : f32 to vector<8x32xf32>
    %127 = arith.mulf %126, %123 : vector<8x32xf32>
    %128 = arith.select %125, %123, %127 : vector<8x32xi1>, vector<8x32xf32>
    %cst_69 = arith.constant 1.41421354 : f32
    %129 = vector.broadcast %cst_69 : f32 to vector<8x32xf32>
    %130 = arith.mulf %128, %129 : vector<8x32xf32>
    %131 = arith.truncf %130 : vector<8x32xf32> to vector<8x32xbf16>
    %c6 = arith.constant 6 : index
    %c0_70 = arith.constant 0 : index
    %c0_71 = arith.constant 0 : index
    %132 = vector.load %arg2[%c6, %c0_70, %c0_71] : memref<8x32x32xf32, #tpu.memory_space<vmem>>, vector<1x32x32xf32>
    %133 = vector.shape_cast %132 : vector<1x32x32xf32> to vector<32x32xf32>
    %134 = arith.truncf %133 : vector<32x32xf32> to vector<32x32xbf16>
    %cst_72 = arith.constant dense<0.000000e+00> : vector<8x32xf32>
    %135 = tpu.matmul %131, %134, %cst_72 {dimension_numbers = #tpu.dot_dimension_numbers<[1], [1], [0], [0], [0, 0, 1, 0], [], []>} : vector<8x32xbf16>, vector<32x32xbf16>, vector<8x32xf32> -> vector<8x32xf32>
    %cst_73 = arith.constant 0.00176776689 : f32
    %136 = vector.broadcast %cst_73 : f32 to vector<8x32xf32>
    %137 = arith.mulf %135, %136 : vector<8x32xf32>
    %c6_74 = arith.constant 6 : index
    %c0_75 = arith.constant 0 : index
    %c0_76 = arith.constant 0 : index
    %138 = vector.load %arg3[%c6_74, %c0_75, %c0_76] : memref<8x1x32xf32, #tpu.memory_space<vmem>>, vector<1x1x32xf32>
    %139 = vector.shape_cast %138 : vector<1x1x32xf32> to vector<1x32xf32>
    %cst_77 = arith.constant 0.00999999977 : f32
    %140 = vector.broadcast %cst_77 : f32 to vector<1x32xf32>
    %141 = arith.mulf %139, %140 : vector<1x32xf32>
    %142 = vector.broadcast %141 : vector<1x32xf32> to vector<8x32xf32>
    %143 = arith.addf %137, %142 : vector<8x32xf32>
    %cst_78 = arith.constant 0.000000e+00 : f32
    %144 = vector.broadcast %cst_78 : f32 to vector<8x32xf32>
    %145 = arith.cmpf oge, %143, %144 : vector<8x32xf32>
    %cst_79 = arith.constant 2.000000e-01 : f32
    %146 = vector.broadcast %cst_79 : f32 to vector<8x32xf32>
    %147 = arith.mulf %146, %143 : vector<8x32xf32>
    %148 = arith.select %145, %143, %147 : vector<8x32xi1>, vector<8x32xf32>
    %cst_80 = arith.constant 1.41421354 : f32
    %149 = vector.broadcast %cst_80 : f32 to vector<8x32xf32>
    %150 = arith.mulf %148, %149 : vector<8x32xf32>
    %151 = arith.truncf %150 : vector<8x32xf32> to vector<8x32xbf16>
    %c7 = arith.constant 7 : index
    %c0_81 = arith.constant 0 : index
    %c0_82 = arith.constant 0 : index
    %152 = vector.load %arg2[%c7, %c0_81, %c0_82] : memref<8x32x32xf32, #tpu.memory_space<vmem>>, vector<1x32x32xf32>
    %153 = vector.shape_cast %152 : vector<1x32x32xf32> to vector<32x32xf32>
    %154 = arith.truncf %153 : vector<32x32xf32> to vector<32x32xbf16>
    %cst_83 = arith.constant dense<0.000000e+00> : vector<8x32xf32>
    %155 = tpu.matmul %151, %154, %cst_83 {dimension_numbers = #tpu.dot_dimension_numbers<[1], [1], [0], [0], [0, 0, 1, 0], [], []>} : vector<8x32xbf16>, vector<32x32xbf16>, vector<8x32xf32> -> vector<8x32xf32>
    %cst_84 = arith.constant 0.00176776689 : f32
    %156 = vector.broadcast %cst_84 : f32 to vector<8x32xf32>
    %157 = arith.mulf %155, %156 : vector<8x32xf32>
    %c7_85 = arith.constant 7 : index
    %c0_86 = arith.constant 0 : index
    %c0_87 = arith.constant 0 : index
    %158 = vector.load %arg3[%c7_85, %c0_86, %c0_87] : memref<8x1x32xf32, #tpu.memory_space<vmem>>, vector<1x1x32xf32>
    %159 = vector.shape_cast %158 : vector<1x1x32xf32> to vector<1x32xf32>
    %cst_88 = arith.constant 0.00999999977 : f32
    %160 = vector.broadcast %cst_88 : f32 to vector<1x32xf32>
    %161 = arith.mulf %159, %160 : vector<1x32xf32>
    %162 = vector.broadcast %161 : vector<1x32xf32> to vector<8x32xf32>
    %163 = arith.addf %157, %162 : vector<8x32xf32>
    %cst_89 = arith.constant 0.000000e+00 : f32
    %164 = vector.broadcast %cst_89 : f32 to vector<8x32xf32>
    %165 = arith.cmpf oge, %163, %164 : vector<8x32xf32>
    %cst_90 = arith.constant 2.000000e-01 : f32
    %166 = vector.broadcast %cst_90 : f32 to vector<8x32xf32>
    %167 = arith.mulf %166, %163 : vector<8x32xf32>
    %168 = arith.select %165, %163, %167 : vector<8x32xi1>, vector<8x32xf32>
    %cst_91 = arith.constant 1.41421354 : f32
    %169 = vector.broadcast %cst_91 : f32 to vector<8x32xf32>
    %170 = arith.mulf %168, %169 : vector<8x32xf32>
    %c0_92 = arith.constant 0 : index
    %c0_93 = arith.constant 0 : index
    %171 = vector.load %arg4[%c0_92, %c0_93] : memref<8x32xf32, #tpu.memory_space<vmem>>, vector<8x32xf32>
    tpu.vector_store %arg4[%c0_92, %c0_93], %170 {strides = array<i32>} : memref<8x32xf32, #tpu.memory_space<vmem>>, vector<8x32xf32>,
    return
  }
  func.func @transform_0(%arg0: i32) -> (i32, i32) {
    %c0_i32 = arith.constant 0 : i32
    %c0_i32_0 = arith.constant 0 : i32
    %c0_i32_1 = arith.constant 0 : i32
    return %c0_i32, %c0_i32_0 : i32, i32
  }
  func.func @transform_1(%arg0: i32) -> (i32, i32, i32) {
    %c0_i32 = arith.constant 0 : i32
    %c0_i32_0 = arith.constant 0 : i32
    %c0_i32_1 = arith.constant 0 : i32
    %c0_i32_2 = arith.constant 0 : i32
    return %c0_i32, %c0_i32_0, %c0_i32_1 : i32, i32, i32
  }
  func.func @transform_2(%arg0: i32) -> (i32, i32, i32) {
    %c0_i32 = arith.constant 0 : i32
    %c0_i32_0 = arith.constant 0 : i32
    %c0_i32_1 = arith.constant 0 : i32
    %c0_i32_2 = arith.constant 0 : i32
    return %c0_i32, %c0_i32_0, %c0_i32_1 : i32, i32, i32
  }
  func.func @transform_3(%arg0: i32) -> (i32, i32) {
    %c0_i32 = arith.constant 0 : i32
    %c0_i32_0 = arith.constant 0 : i32
    %c0_i32_1 = arith.constant 0 : i32
    return %c0_i32, %c0_i32_0 : i32, i32
  }
}

</mosaic_0001>

<bundles_post_ra>
// kernel: tpu_custom_call.1
= control target key start
LH: loop header
LB: loop body
LE: loop exit
PB: predicated region body
PF: predicated region fallthrough
CT: control target
= control target key end

     0   :  { %8 = vsyncpa [#allocation3], 0  ;;  %s1005_s0 = inlined_call_operand.hbm [shape: f32[8,32], index: 0, kind: input, shape index: {}]   ;;  %s1006_s1 = inlined_call_operand.hbm [shape: f32[8,32,32], index: 1, kind: input, shape index: {}]   ;;  %s1007_s2 = inlined_call_operand.hbm [shape: f32[8,1,32], index: 2, kind: input, shape index: {}]   ;;  %s1008_s3 = inlined_call_operand.hbm [shape: f32[8,32], index: 3, kind: output, shape index: {}]  }
   0x1   :  { %9 = vsyncpa [#allocation6], 0 }
   0x2   :  { %10 = vsyncpa [#allocation4], 0  ;;  %s859_s12 = smov [#allocation5]   ;;  %s765_s16 = scalar_lea.hbm %s1006_s1, 4096 }
   0x3   :  { %s26_s13 = sshll.u32 %s859_s12, 4  ;;  %p766_p0 = scmp.ne.s32.totalorder %s1006_s1, %s765_s16  ;;  %s27_s13 = int_to_ptr.vmem [resolvable:$true] %s26_s13 }
   0x4   :  { %p769_p1 = scmp.lt.u32.totalorder %s765_s16, %s1006_s1 }
   0x6   :  { %p771_p2 = pnand %p769_p1, %p766_p0 }
   0x8   :  { %774 = shalt.err (!%p771_p2)
}
   0x9   :  { %s775_s21 = scalar_lea.vmem %s27_s13, 4096  ;;  %p780_p4 = scmp.lt.s32.totalorder %s27_s13, %s27_s13 }
   0xa   :  { %p776_p3 = scmp.ne.s32.totalorder %s27_s13, %s775_s21  ;;  %p781_p5 = scmp.lt.s32.totalorder %s775_s21, %s775_s21 }
   0xc   :  { %p782_p6 = por %p781_p5, %p780_p4 }
   0xe   :  { %p783_p7 = pnand %p782_p6, %p776_p3 }
  0x10   :  { %786 = shalt.err (!%p783_p7)
}
  0x11   :  { %s860_s22 = smov 128   ;;  %s861_s23 = smov 8  }
  0x12   :  { %32 = dma.hbm_to_vmem [thread:$0]  %s1006_s1, 4096, %s27_s13, [#allocation6], %s860_s22, %s860_s22, %s861_s23  }
  0x13   :  { %s862_s26 = smov [#allocation2]   ;;  %s863_s28 = smov [#allocation7]  }
  0x14   :  { %s17_s27 = sshll.u32 %s862_s26, 4  ;;  %s38_s29 = sshll.u32 %s863_s28, 4  ;;  %s18_s27 = int_to_ptr.vmem [resolvable:$true] %s17_s27  ;;  %s39_s29 = int_to_ptr.vmem [resolvable:$true] %s38_s29 }
  0x15   :  { %s787_s5 = scalar_lea.hbm %s1005_s0, 128 }
  0x16   :  { %p788_p8 = scmp.ne.s32.totalorder %s1005_s0, %s787_s5  ;;  %p791_p9 = scmp.lt.u32.totalorder %s787_s5, %s1005_s0 }
  0x18   :  { %p793_p10 = pnand %p791_p9, %p788_p8 }
  0x1a   :  { %796 = shalt.err (!%p793_p10)
}
  0x1b   :  { %s797_s1 = scalar_lea.vmem %s18_s27, 128  ;;  %p802_p12 = scmp.lt.s32.totalorder %s18_s27, %s18_s27 }
  0x1c   :  { %p798_p11 = scmp.ne.s32.totalorder %s18_s27, %s797_s1  ;;  %p803_p13 = scmp.lt.s32.totalorder %s797_s1, %s797_s1 }
  0x1e   :  { %p804_p0 = por %p803_p13, %p802_p12 }
  0x20   :  { %p805_p1 = pnand %p804_p0, %p798_p11 }
  0x22   :  { %808 = shalt.err (!%p805_p1)
}
  0x23   :  { %20 = dma.hbm_to_vmem [thread:$0]  %s1005_s0, 128, %s18_s27, [#allocation3]  }
  0x24   :  { %s809_s14 = scalar_lea.hbm %s1007_s2, 128 }
  0x25   :  { %p810_p2 = scmp.ne.s32.totalorder %s1007_s2, %s809_s14  ;;  %p813_p3 = scmp.lt.u32.totalorder %s809_s14, %s1007_s2 }
  0x27   :  { %p815_p4 = pnand %p813_p3, %p810_p2 }
  0x29   :  { %818 = shalt.err (!%p815_p4)
}
  0x2a   :  { %s819_s19 = scalar_lea.vmem %s39_s29, 128  ;;  %p824_p6 = scmp.lt.s32.totalorder %s39_s29, %s39_s29 }
  0x2b   :  { %p820_p5 = scmp.ne.s32.totalorder %s39_s29, %s819_s19  ;;  %p825_p7 = scmp.lt.s32.totalorder %s819_s19, %s819_s19 }
  0x2d   :  { %p826_p8 = por %p825_p7, %p824_p6 }
  0x2f   :  { %p827_p9 = pnand %p826_p8, %p820_p5 }
  0x31   :  { %830 = shalt.err (!%p827_p9)
}
  0x32   :  { %s864_s0 = smov 16   ;;  %s865_s20 = smov 1  }
  0x33   :  { %44 = dma.hbm_to_vmem [thread:$0]  %s1007_s2, 128, %s39_s29, [#allocation6], %s864_s0, %s864_s0, %s865_s20  }
  0x34   :  { %853 = dma.done.wait [#allocation3], 128  }
  0x35   :  { %854 = vsyncadd [#allocation3], 4294967168 }
  0x36   :  { %855 = dma.done.wait [#allocation6], 4224  }
  0x37   :  { %856 = vsyncadd [#allocation6], 4294963072  ;;  %v55_v0 = vld [vmem:[#allocation2] sm:$0xff]  ;;  %vm57_vm0 = vcmask 261120   ;;  %v67_v3 = vld [vmem:[#allocation5] sm:$0xff]  ;;  %v866_v6 = vmov 0.0   ;;  %v126_v30 = vlaneseq }
  0x38   :  { %v56_v1 = vmul.f32 %v55_v0, %v55_v0  ;;  %v68_v4 = vld [vmem:[#allocation5 + $0x8] sm:$0xff]  ;;  %689 = vmatprep.subr.bf16.mxu0 %v866_v6  ;;  %697 = vmatprep.subr.bf16.mxu1 %v866_v6  ;;  %v69_v8 = vld [vmem:[#allocation5 + $0x10] sm:$0xff]  ;;  %v70_v9 = vld [vmem:[#allocation5 + $0x18] sm:$0xff]  ;;  %vm867_vm1 = vmmov 0   ;;  %s868_s2 = smov [#allocation8]  }
  0x39   :  { %v71_v5 = vpack.c.bf16 %v68_v4, %v67_v3  ;;  %v72_v10 = vpack.c.bf16 %v70_v9, %v69_v8  ;;  %693 = vmatprep.mubr.msk.bf16.mxu0 %vm867_vm1, %v866_v6  ;;  %701 = vmatprep.mubr.msk.bf16.mxu1 %vm867_vm1, %v866_v6  ;;  %v138_v12 = vld [vmem:[#allocation5 + $0x20] sm:$0xff]  ;;  %v139_v13 = vld [vmem:[#allocation5 + $0x28] sm:$0xff]  ;;  %v140_v22 = vld [vmem:[#allocation5 + $0x30] sm:$0xff]  ;;  %v127_v31 = vshrl.u32 %v126_v30, 7  ;;  %s647_s23 = sshll.u32 %s868_s2, 4  ;;  %s648_s23 = int_to_ptr.vmem [resolvable:$true] %s647_s23 }
  0x3a   :  { %v58_v2 = vsel %vm57_vm0, %v56_v1, 0.0  ;;  %v142_v14 = vpack.c.bf16 %v139_v13, %v138_v12  ;;  %v141_v23 = vld [vmem:[#allocation5 + $0x38] sm:$0xff]  ;;  %v210_v26 = vld [vmem:[#allocation5 + $0x40] sm:$0xff]  ;;  %v211_v27 = vld [vmem:[#allocation5 + $0x48] sm:$0xff]  ;;  %s831_s24 = scalar_lea.vmem %s648_s23, 128  ;;  %p836_p11 = scmp.lt.s32.totalorder %s648_s23, %s648_s23 }
  0x3b   :  { %59 = vadd.xlane.f32.xlu0 %v58_v2  ;;  %v77_v7 = vsel %vm57_vm0, %v71_v5, 0  ;;  %v80_v11 = vsel %vm57_vm0, %v72_v10, 0  ;;  %v143_v24 = vpack.c.bf16 %v141_v23, %v140_v22  ;;  %v214_v28 = vpack.c.bf16 %v211_v27, %v210_v26  ;;  %v123_v32 = vld [vmem:[#allocation7] sm:$0x1]  ;;  %v212_v46 = vld [vmem:[#allocation5 + $0x50] sm:$0xff]  ;;  %v213_v47 = vld [vmem:[#allocation5 + $0x58] sm:$0xff]  ;;  %p832_p10 = scmp.ne.s32.totalorder %s648_s23, %s831_s24  ;;  %p837_p12 = scmp.lt.s32.totalorder %s831_s24, %s831_s24 }
  0x3c   :  { %690 = vmatpush3.bf16.xpose.msra.mxu0 %v77_v7  ;;  %v148_v15 = vsel %vm57_vm0, %v142_v14, 0  ;;  %v124_v33 = vmul.f32 0.01, %v123_v32  ;;  %v945_v34 = vsub.s32 0, %v127_v31  ;;  %v215_v48 = vpack.c.bf16 %v213_v47, %v212_v46  ;;  %v282_v50 = vld [vmem:[#allocation5 + $0x60] sm:$0xff]  ;;  %v283_v51 = vld [vmem:[#allocation5 + $0x68] sm:$0xff] }
  0x3d   :  { %691 = vmatprep.subr.bf16.mxu0 %v866_v6  ;;  %698 = vmatpush3.bf16.xpose.msra.mxu1 %v148_v15  ;;  %v151_v25 = vsel %vm57_vm0, %v143_v24, 0  ;;  %v220_v29 = vsel %vm57_vm0, %v214_v28, 0  ;;  %v286_v52 = vpack.c.bf16 %v283_v51, %v282_v50  ;;  %v195_v54 = vld [vmem:[#allocation7 + $0x1] sm:$0x1]  ;;  %v284_v3 = vld [vmem:[#allocation5 + $0x70] sm:$0xff]  ;;  %v285_v4 = vld [vmem:[#allocation5 + $0x78] sm:$0xff]  ;;  %p838_p13 = por %p837_p12, %p836_p11 }
  0x3e   :  { %699 = vmatprep.subr.bf16.mxu1 %v866_v6  ;;  %v129_v35 = vrot.slane %v124_v33, %v945_v34  ;;  %v223_v49 = vsel %vm57_vm0, %v215_v48, 0  ;;  %v196_v55 = vmul.f32 0.01, %v195_v54  ;;  %v287_v5 = vpack.c.bf16 %v285_v4, %v284_v3  ;;  %v354_v8 = vld [vmem:[#allocation5 + $0x80] sm:$0xff]  ;;  %v355_v9 = vld [vmem:[#allocation5 + $0x88] sm:$0xff]  ;;  %v357_v26 = vld [vmem:[#allocation5 + $0x98] sm:$0xff] }
  0x3f   :  { %v292_v53 = vsel %vm57_vm0, %v286_v52, 0  ;;  %v358_v10 = vpack.c.bf16 %v355_v9, %v354_v8  ;;  %v267_v12 = vld [vmem:[#allocation7 + $0x2] sm:$0x1]  ;;  %v427_v30 = vld [vmem:[#allocation5 + $0xa8] sm:$0xff]  ;;  %v339_v33 = vld [vmem:[#allocation7 + $0x3] sm:$0x1]  ;;  %p839_p0 = pnand %p838_p13, %p832_p10 }
  0x40   :  { %v201_v56 = vrot.slane %v196_v55, %v945_v34  ;;  %v295_v7 = vsel %vm57_vm0, %v287_v5, 0  ;;  %v268_v13 = vmul.f32 0.01, %v267_v12  ;;  %v428_v47 = vld [vmem:[#allocation5 + $0xb0] sm:$0xff]  ;;  %v429_v48 = vld [vmem:[#allocation5 + $0xb8] sm:$0xff]  ;;  %v498_v51 = vld [vmem:[#allocation5 + $0xc0] sm:$0xff] }
  0x41   :  { %v499_v52 = vld [vmem:[#allocation5 + $0xc8] sm:$0xff]  ;;  %v411_v55 = vld [vmem:[#allocation7 + $0x4] sm:$0x1]  ;;  %v500_v4 = vld [vmem:[#allocation5 + $0xd0] sm:$0xff] }
  0x42   :  { %v273_v14 = vrot.slane %v268_v13, %v945_v34  ;;  %v501_v5 = vld [vmem:[#allocation5 + $0xd8] sm:$0xff]  ;;  %v570_v9 = vld [vmem:[#allocation5 + $0xe0] sm:$0xff] }
  0x43   :  { %v483_v13 = vld [vmem:[#allocation7 + $0x5] sm:$0x1] }
  0x44   :  { %692 = vmatpush3.bf16.xpose.msra.mxu0 %v80_v11  ;;  %v364_v11 = vsel %vm57_vm0, %v358_v10, 0  ;;  %v571_v10 = vld [vmem:[#allocation5 + $0xe8] sm:$0xff] }
  0x45   :  { %705 = vmatprep.subr.bf16.mxu0 %v866_v6  ;;  %700 = vmatpush3.bf16.xpose.msra.mxu1 %v151_v25  ;;  %v356_v25 = vld [vmem:[#allocation5 + $0x90] sm:$0xff] }
  0x46   :  { %713 = vmatprep.subr.bf16.mxu1 %v866_v6  ;;  %v359_v27 = vpack.c.bf16 %v357_v26, %v356_v25  ;;  %v572_v26 = vld [vmem:[#allocation5 + $0xf0] sm:$0xff] }
  0x48   :  { %v367_v28 = vsel %vm57_vm0, %v359_v27, 0  ;;  %v573_v27 = vld [vmem:[#allocation5 + $0xf8] sm:$0xff] }
  0xc8   :  { %v60_v16 = vpop.xlane.xlu0 %59 }
  0xc9   :  { %v62_v17 = vmul.f32 0.03125, %v60_v16 }
  0xcb   :  { %v63_v18 = vadd.f32 1e-08, %v62_v17 }
  0xcd   :  { %763 = vrsqrt.f32 %v63_v18 }
  0xd7   :  { %v764_v19 = vpop.eup %763 }
  0xd8   :  { %v65_v20 = vmul.f32 %v764_v19, %v55_v0 }
  0xda   :  { %v66_v21 = vpack.c.bf16 %v65_v20, %v65_v20 }
  0xdc   :  { %694 = vmatmul.mubr.msk.bf16.vlgmr.msra.gmra.mrb[0].mxu0 %vm57_vm0, %v66_v21 }
  0xdd   :  { %709 = vmatprep.mubr.msk.bf16.mxu0 %vm867_vm1, %v866_v6  ;;  %706 = vmatpush3.bf16.xpose.msra.mxu0 %v220_v29  ;;  %v426_v29 = vld [vmem:[#allocation5 + $0xa0] sm:$0xff] }
  0xde   :  { %707 = vmatprep.subr.bf16.mxu0 %v866_v6  ;;  %v430_v31 = vpack.c.bf16 %v427_v30, %v426_v29  ;;  %v555_v29 = vld [vmem:[#allocation7 + $0x6] sm:$0x1] }
  0xdf   :  { %v556_v30 = vmul.f32 0.01, %v555_v29 }
  0xe0   :  { %v436_v32 = vsel %vm57_vm0, %v430_v31, 0 }
  0xe1   :  { %v561_v31 = vrot.slane %v556_v30, %v945_v34 }
  0xe5   :  { %708 = vmatpush3.bf16.xpose.msra.mxu0 %v223_v49  ;;  %v431_v49 = vpack.c.bf16 %v429_v48, %v428_v47 }
  0xe6   :  { %721 = vmatprep.subr.bf16.mxu0 %v866_v6 }
  0xe7   :  { %v439_v50 = vsel %vm57_vm0, %v431_v49, 0 }
 0x1af   :  { %v116_v36 = vpop.f32.mrb[0].mxu0 }
 0x1b0   :  { %v122_v37 = vmul.f32 0.0017677669, %v116_v36  ;;  %v695_v38 = vpop.f32.mrb[1].mxu0 }
 0x1b1   :  { %v119_v39 = vpop.f32.mrb[2].mxu0 }
 0x1b2   :  { %v131_v40 = vadd.f32 %v129_v35, %v122_v37  ;;  %v696_v41 = vpop.f32.mrb[3].mxu0  ;;  %v340_v35 = vmul.f32 0.01, %v339_v33 }
 0x1b4   :  { %vm132_vm2 = vcmp.ge.f32.partialorder %v131_v40, 0.0  ;;  %v133_v42 = vmul.f32 0.2, %v131_v40  ;;  %v345_v36 = vrot.slane %v340_v35, %v945_v34 }
 0x1b6   :  { %v134_v43 = vsel %vm132_vm2, %v131_v40, %v133_v42 }
 0x1b7   :  { %v135_v44 = vmul.f32 1.4142135, %v134_v43 }
 0x1b9   :  { %v136_v45 = vpack.c.bf16 %v135_v44, %v135_v44 }
 0x1bb   :  { %702 = vmatmul.mubr.msk.bf16.vlgmr.msra.gmra.mrb[0].mxu1 %vm57_vm0, %v136_v45 }
 0x1bc   :  { %717 = vmatprep.mubr.msk.bf16.mxu1 %vm867_vm1, %v866_v6  ;;  %714 = vmatpush3.bf16.xpose.msra.mxu1 %v292_v53  ;;  %v502_v53 = vpack.c.bf16 %v499_v52, %v498_v51 }
 0x1bd   :  { %715 = vmatprep.subr.bf16.mxu1 %v866_v6 }
 0x1be   :  { %v508_v54 = vsel %vm57_vm0, %v502_v53, 0 }
 0x1c4   :  { %716 = vmatpush3.bf16.xpose.msra.mxu1 %v295_v7  ;;  %v503_v7 = vpack.c.bf16 %v501_v5, %v500_v4 }
 0x1c5   :  { %729 = vmatprep.subr.bf16.mxu1 %v866_v6 }
 0x1c6   :  { %v511_v8 = vsel %vm57_vm0, %v503_v7, 0 }
 0x28e   :  { %v187_v57 = vpop.f32.mrb[0].mxu1 }
 0x28f   :  { %v193_v58 = vmul.f32 0.0017677669, %v187_v57  ;;  %v703_v59 = vpop.f32.mrb[1].mxu1 }
 0x290   :  { %v190_v60 = vpop.f32.mrb[2].mxu1 }
 0x291   :  { %v203_v61 = vadd.f32 %v201_v56, %v193_v58  ;;  %v704_v62 = vpop.f32.mrb[3].mxu1  ;;  %v412_v56 = vmul.f32 0.01, %v411_v55 }
 0x293   :  { %vm204_vm3 = vcmp.ge.f32.partialorder %v203_v61, 0.0  ;;  %v205_v63 = vmul.f32 0.2, %v203_v61  ;;  %v417_v57 = vrot.slane %v412_v56, %v945_v34 }
 0x295   :  { %v206_v0 = vsel %vm204_vm3, %v203_v61, %v205_v63 }
 0x296   :  { %v207_v1 = vmul.f32 1.4142135, %v206_v0 }
 0x298   :  { %v208_v2 = vpack.c.bf16 %v207_v1, %v207_v1 }
 0x29a   :  { %710 = vmatmul.mubr.msk.bf16.vlgmr.msra.gmra.mrb[4].mxu0 %vm57_vm0, %v208_v2 }
 0x29b   :  { %725 = vmatprep.mubr.msk.bf16.mxu0 %vm867_vm1, %v866_v6  ;;  %722 = vmatpush3.bf16.xpose.msra.mxu0 %v364_v11  ;;  %v574_v11 = vpack.c.bf16 %v571_v10, %v570_v9 }
 0x29c   :  { %723 = vmatprep.subr.bf16.mxu0 %v866_v6 }
 0x29d   :  { %v580_v12 = vsel %vm57_vm0, %v574_v11, 0 }
 0x2a3   :  { %724 = vmatpush3.bf16.xpose.msra.mxu0 %v367_v28 }
 0x2a4   :  { %737 = vmatprep.subr.bf16.mxu0 %v866_v6 }
 0x36d   :  { %v259_v15 = vpop.f32.mrb[4].mxu0 }
 0x36e   :  { %v265_v16 = vmul.f32 0.0017677669, %v259_v15  ;;  %v711_v17 = vpop.f32.mrb[5].mxu0 }
 0x36f   :  { %v262_v18 = vpop.f32.mrb[6].mxu0 }
 0x370   :  { %v275_v19 = vadd.f32 %v273_v14, %v265_v16  ;;  %v712_v20 = vpop.f32.mrb[7].mxu0  ;;  %v484_v14 = vmul.f32 0.01, %v483_v13 }
 0x372   :  { %vm276_vm4 = vcmp.ge.f32.partialorder %v275_v19, 0.0  ;;  %v277_v21 = vmul.f32 0.2, %v275_v19  ;;  %v489_v15 = vrot.slane %v484_v14, %v945_v34 }
 0x374   :  { %v278_v22 = vsel %vm276_vm4, %v275_v19, %v277_v21 }
 0x375   :  { %v279_v23 = vmul.f32 1.4142135, %v278_v22 }
 0x377   :  { %v280_v24 = vpack.c.bf16 %v279_v23, %v279_v23 }
 0x379   :  { %718 = vmatmul.mubr.msk.bf16.vlgmr.msra.gmra.mrb[4].mxu1 %vm57_vm0, %v280_v24 }
 0x37a   :  { %733 = vmatprep.mubr.msk.bf16.mxu1 %vm867_vm1, %v866_v6  ;;  %730 = vmatpush3.bf16.xpose.msra.mxu1 %v436_v32 }
 0x37b   :  { %731 = vmatprep.subr.bf16.mxu1 %v866_v6 }
 0x382   :  { %732 = vmatpush3.bf16.xpose.msra.mxu1 %v439_v50 }
 0x383   :  { %745 = vmatprep.subr.bf16.mxu1 %v866_v6 }
 0x44c   :  { %v331_v37 = vpop.f32.mrb[4].mxu1 }
 0x44d   :  { %v337_v38 = vmul.f32 0.0017677669, %v331_v37  ;;  %v719_v39 = vpop.f32.mrb[5].mxu1 }
 0x44e   :  { %v334_v40 = vpop.f32.mrb[6].mxu1 }
 0x44f   :  { %v347_v41 = vadd.f32 %v345_v36, %v337_v38  ;;  %v720_v42 = vpop.f32.mrb[7].mxu1 }
 0x451   :  { %vm348_vm5 = vcmp.ge.f32.partialorder %v347_v41, 0.0  ;;  %v349_v43 = vmul.f32 0.2, %v347_v41 }
 0x453   :  { %v350_v44 = vsel %vm348_vm5, %v347_v41, %v349_v43  ;;  %v627_v43 = vld [vmem:[#allocation7 + $0x7] sm:$0x1] }
 0x454   :  { %v351_v45 = vmul.f32 1.4142135, %v350_v44  ;;  %v628_v44 = vmul.f32 0.01, %v627_v43 }
 0x456   :  { %v352_v46 = vpack.c.bf16 %v351_v45, %v351_v45  ;;  %v633_v45 = vrot.slane %v628_v44, %v945_v34 }
 0x458   :  { %726 = vmatmul.mubr.msk.bf16.vlgmr.msra.gmra.mrb[8].mxu0 %vm57_vm0, %v352_v46 }
 0x459   :  { %741 = vmatprep.mubr.msk.bf16.mxu0 %vm867_vm1, %v866_v6  ;;  %738 = vmatpush3.bf16.xpose.msra.mxu0 %v508_v54 }
 0x45a   :  { %739 = vmatprep.subr.bf16.mxu0 %v866_v6 }
 0x461   :  { %740 = vmatpush3.bf16.xpose.msra.mxu0 %v511_v8 }
 0x52b   :  { %v403_v58 = vpop.f32.mrb[8].mxu0 }
 0x52c   :  { %v409_v59 = vmul.f32 0.0017677669, %v403_v58  ;;  %v727_v60 = vpop.f32.mrb[9].mxu0 }
 0x52d   :  { %v406_v61 = vpop.f32.mrb[10].mxu0 }
 0x52e   :  { %v419_v62 = vadd.f32 %v417_v57, %v409_v59  ;;  %v728_v63 = vpop.f32.mrb[11].mxu0 }
 0x530   :  { %vm420_vm6 = vcmp.ge.f32.partialorder %v419_v62, 0.0  ;;  %v421_v0 = vmul.f32 0.2, %v419_v62 }
 0x532   :  { %v422_v1 = vsel %vm420_vm6, %v419_v62, %v421_v0 }
 0x533   :  { %v423_v2 = vmul.f32 1.4142135, %v422_v1 }
 0x535   :  { %v424_v3 = vpack.c.bf16 %v423_v2, %v423_v2 }
 0x537   :  { %734 = vmatmul.mubr.msk.bf16.vlgmr.msra.gmra.mrb[8].mxu1 %vm57_vm0, %v424_v3 }
 0x538   :  { %749 = vmatprep.mubr.msk.bf16.mxu1 %vm867_vm1, %v866_v6  ;;  %746 = vmatpush3.bf16.xpose.msra.mxu1 %v580_v12 }
 0x539   :  { %747 = vmatprep.subr.bf16.mxu1 %v866_v6  ;;  %v575_v6 = vpack.c.bf16 %v573_v27, %v572_v26 }
 0x53b   :  { %v583_v28 = vsel %vm57_vm0, %v575_v6, 0 }
 0x540   :  { %748 = vmatpush3.bf16.xpose.msra.mxu1 %v583_v28 }
 0x60a   :  { %v475_v16 = vpop.f32.mrb[8].mxu1 }
 0x60b   :  { %v481_v17 = vmul.f32 0.0017677669, %v475_v16  ;;  %v735_v18 = vpop.f32.mrb[9].mxu1 }
 0x60c   :  { %v478_v19 = vpop.f32.mrb[10].mxu1 }
 0x60d   :  { %v491_v20 = vadd.f32 %v489_v15, %v481_v17  ;;  %v736_v21 = vpop.f32.mrb[11].mxu1 }
 0x60f   :  { %vm492_vm7 = vcmp.ge.f32.partialorder %v491_v20, 0.0  ;;  %v493_v22 = vmul.f32 0.2, %v491_v20 }
 0x611   :  { %v494_v23 = vsel %vm492_vm7, %v491_v20, %v493_v22 }
 0x612   :  { %v495_v24 = vmul.f32 1.4142135, %v494_v23 }
 0x614   :  { %v496_v25 = vpack.c.bf16 %v495_v24, %v495_v24 }
 0x616   :  { %742 = vmatmul.mubr.msk.bf16.vlgmr.msra.gmra.mrb[12].mxu0 %vm57_vm0, %v496_v25 }
 0x6e9   :  { %v547_v32 = vpop.f32.mrb[12].mxu0 }
 0x6ea   :  { %v553_v33 = vmul.f32 0.0017677669, %v547_v32  ;;  %v743_v35 = vpop.f32.mrb[13].mxu0 }
 0x6eb   :  { %v550_v36 = vpop.f32.mrb[14].mxu0 }
 0x6ec   :  { %v563_v37 = vadd.f32 %v561_v31, %v553_v33  ;;  %v744_v38 = vpop.f32.mrb[15].mxu0 }
 0x6ee   :  { %vm564_vm8 = vcmp.ge.f32.partialorder %v563_v37, 0.0  ;;  %v565_v39 = vmul.f32 0.2, %v563_v37 }
 0x6f0   :  { %v566_v40 = vsel %vm564_vm8, %v563_v37, %v565_v39 }
 0x6f1   :  { %v567_v41 = vmul.f32 1.4142135, %v566_v40 }
 0x6f3   :  { %v568_v42 = vpack.c.bf16 %v567_v41, %v567_v41 }
 0x6f5   :  { %750 = vmatmul.mubr.msk.bf16.vlgmr.msra.gmra.mrb[12].mxu1 %vm57_vm0, %v568_v42 }
 0x7c8   :  { %v619_v46 = vpop.f32.mrb[12].mxu1 }
 0x7c9   :  { %v625_v47 = vmul.f32 0.0017677669, %v619_v46  ;;  %v751_v48 = vpop.f32.mrb[13].mxu1 }
 0x7ca   :  { %v622_v49 = vpop.f32.mrb[14].mxu1 }
 0x7cb   :  { %v635_v50 = vadd.f32 %v633_v45, %v625_v47  ;;  %v752_v51 = vpop.f32.mrb[15].mxu1 }
 0x7cd   :  { %vm636_vm9 = vcmp.ge.f32.partialorder %v635_v50, 0.0  ;;  %v637_v52 = vmul.f32 0.2, %v635_v50 }
 0x7cf   :  { %v638_v53 = vsel %vm636_vm9, %v635_v50, %v637_v52 }
 0x7d0   :  { %v639_v54 = vmul.f32 1.4142135, %v638_v53 }
 0x7d2   :  { %640 = vst.msk [vmem:[#allocation8] sm:$0xff] %vm57_vm0, %v639_v54 }
 0x7d3   :  { %842 = shalt.err (!%p839_p0)
}
 0x7d4   :  { %s843_s27 = scalar_lea.hbm %s1008_s3, 128 }
 0x7d5   :  { %p844_p1 = scmp.ne.s32.totalorder %s1008_s3, %s843_s27  ;;  %p847_p2 = scmp.lt.u32.totalorder %s843_s27, %s1008_s3 }
 0x7d7   :  { %p849_p3 = pnand %p847_p2, %p844_p1 }
 0x7d9   :  { %852 = shalt.err (!%p849_p3)
}
 0x7da   :  { %650 = dma.vmem_to_hbm [thread:$0]  %s648_s23, 128, %s1008_s3, [#allocation4]  }
 0x7db   :  { %857 = dma.done.wait [#allocation4], 128  }
 0x7dc   :  { %858 = vsyncadd [#allocation4], 4294967168 }
 0x7dd   :  { %654 = vsyncpa [#allocation3], 1 }
 0x7de   :  { %655 = vsyncpa [#allocation6], 1 }
 0x7df   :  { %656 = vsyncpa [#allocation4], 1 }

</bundles_post_ra>
